<compile_context>
chip_gen: v5e
topology: v5e:2x2
jax: 0.10.0
libtpu: 0.0.40
codegen_flags: <defaults>
</compile_context>

<pallas_src>
import jax
import jax.numpy as jnp
from jax.experimental import pallas as pl
from jax.experimental.pallas import tpu as pltpu


def decoder_kernel(xh0_ref, c0_ref, w_gates_ref, b_gates_ref, w_out_ref, b_out_ref,
                   out_ref, h1_ref, c1_ref,
                   xh_scr, c_scr):
    t = pl.program_id(0)
    H = c_scr.shape[-1]
    I = out_ref.shape[-1]

    # Initialize the carried state from the kernel inputs on the first step only.
    @pl.when(t == 0)
    def _():
        xh_scr[...] = xh0_ref[...]          # [x0 | h0]  (B, I+H)
        c_scr[...] = c0_ref[...]            # c0         (B, H)

    xh = xh_scr[...]                        # (B, I+H)
    c_prev = c_scr[...]                     # (B, H)

    # One fused MXU pass for all four gates:
    #   [x | h] @ [W_ih^T ; W_hh^T] + (b_ih + b_hh)   -> (B, 4H)
    gates = (jnp.dot(xh, w_gates_ref[...], preferred_element_type=jnp.float32)
             + b_gates_ref[...])

    # Full-vreg transcendentals (EUP) + a single lane-index select.
    # PyTorch gate order [i, f, g, o]: only the g block (lanes [2H, 3H)) uses tanh.
    lane = jax.lax.broadcasted_iota(jnp.int32, gates.shape, 1)
    is_tanh = (lane >= 2 * H) & (lane < 3 * H)
    act = jnp.where(is_tanh, jnp.tanh(gates), jax.nn.sigmoid(gates))

    i_g = act[:, 0 * H:1 * H]
    f_g = act[:, 1 * H:2 * H]
    g_g = act[:, 2 * H:3 * H]
    o_g = act[:, 3 * H:4 * H]

    c_new = f_g * c_prev + i_g * g_g
    h_new = o_g * jnp.tanh(c_new)

    # Fused output projection + state re-pack in one aligned full-width MXU result:
    #   W_out = [W_lin^T | I_H], b_out = [b_lin | 0]
    #   cols [0:I)   = h_new @ W_lin^T + b_lin   (the decoder output)
    #   cols [I:I+H) = h_new                     (next step's recurrent input)
    next_xh = (jnp.dot(h_new, w_out_ref[...], preferred_element_type=jnp.float32)
               + b_out_ref[...])                # (B, I+H)

    # Per-step output slab write; final h/c live in resident output blocks
    # (written back to HBM once, at the end of the grid).
    out_ref[...] = next_xh[:, :I].astype(out_ref.dtype)
    h1_ref[...] = h_new.astype(h1_ref.dtype)
    c1_ref[...] = c_new.astype(c1_ref.dtype)

    # Carry state for the next step entirely in VMEM (autoregressive feedback:
    # next x is the current output).
    xh_scr[...] = next_xh
    c_scr[...] = c_new


def _prep_params(w_ih, w_hh, b_ih, b_hh, w_lin, b_lin):
    H = w_hh.shape[1]
    I = w_ih.shape[1]
    w_gates = jnp.concatenate([w_ih.T, w_hh.T], axis=0).astype(jnp.float32)     # (I+H, 4H)
    b_gates = (b_ih + b_hh).reshape(1, 4 * H).astype(jnp.float32)               # (1, 4H)
    w_out = jnp.concatenate(
        [w_lin.T.astype(jnp.float32), jnp.eye(H, dtype=jnp.float32)], axis=1)   # (H, I+H)
    b_out = jnp.concatenate(
        [b_lin.astype(jnp.float32), jnp.zeros((H,), jnp.float32)]).reshape(1, I + H)
    return w_gates, b_gates, w_out, b_out


def decoder_decode(x0, h0, c0, w_ih, w_hh, b_ih, b_hh, w_lin, b_lin, num_steps=1):
    """Run `num_steps` autoregressive Decoder steps in ONE Pallas kernel launch.
    x0: (B, I); h0/c0: (1, B, H) PyTorch-style. Returns (outputs (T, B, I), (h_T, c_T))."""
    B, I = x0.shape
    H = w_hh.shape[1]

    h0_2d = h0.reshape(B, H).astype(jnp.float32)
    c0_2d = c0.reshape(B, H).astype(jnp.float32)
    xh0 = jnp.concatenate([x0.astype(jnp.float32), h0_2d], axis=1)              # (B, I+H)
    w_gates, b_gates, w_out, b_out = _prep_params(w_ih, w_hh, b_ih, b_hh, w_lin, b_lin)

    const = lambda t: (0, 0)   # resident blocks: same block every grid step -> one DMA

    out_seq, h1, c1 = pl.pallas_call(
        decoder_kernel,
        out_shape=(
            jax.ShapeDtypeStruct((num_steps, B, I), jnp.float32),
            jax.ShapeDtypeStruct((B, H), jnp.float32),
            jax.ShapeDtypeStruct((B, H), jnp.float32),
        ),
        grid_spec=pltpu.PrefetchScalarGridSpec(
            num_scalar_prefetch=0,
            grid=(num_steps,),
            in_specs=[
                pl.BlockSpec((B, I + H), const),          # xh0 (used at t==0 only)
                pl.BlockSpec((B, H), const),              # c0  (used at t==0 only)
                pl.BlockSpec((I + H, 4 * H), const),      # fused gate weight (resident)
                pl.BlockSpec((1, 4 * H), const),          # fused gate bias   (resident)
                pl.BlockSpec((H, I + H), const),          # [W_lin^T | I]     (resident)
                pl.BlockSpec((1, I + H), const),          # [b_lin | 0]       (resident)
            ],
            out_specs=(
                pl.BlockSpec((None, B, I), lambda t: (t, 0, 0)),  # per-step outputs
                pl.BlockSpec((B, H), const),                      # final hidden
                pl.BlockSpec((B, H), const),                      # final cell
            ),
            scratch_shapes=[
                pltpu.VMEM((B, I + H), jnp.float32),      # carried [x | h]
                pltpu.VMEM((B, H), jnp.float32),          # carried c
            ],
        ),
        compiler_params=pltpu.CompilerParams(
            dimension_semantics=("arbitrary",),           # time axis carries state
        ),
    )(xh0, c0_2d, w_gates, b_gates, w_out, b_out)

    # TODO(synk): for large multi-sequence decode on v7x, add a leading "parallel"
    # batch-shard grid axis so both TensorCores get work.
    return out_seq, (h1.reshape(1, B, H), c1.reshape(1, B, H))


def decoder_forward(x, h0, c0, w_ih, w_hh, b_ih, b_hh, w_lin, b_lin):
    """Exact semantics of Decoder.forward: one LSTM step + Linear.
    Returns (output (B, I), (h_n (1,B,H), c_n (1,B,H)))."""
    out_seq, (h1, c1) = decoder_decode(x, h0, c0, w_ih, w_hh, b_ih, b_hh,
                                       w_lin, b_lin, num_steps=1)
    return out_seq[0], (h1, c1)


def _reference_decode(x, h0, c0, w_ih, w_hh, b_ih, b_hh, w_lin, b_lin, num_steps):
    """Pure-JAX reference: num_steps autoregressive (output-fed-back) decoder steps."""
    B, _ = x.shape
    H = w_hh.shape[1]
    h = h0.reshape(B, H)
    c = c0.reshape(B, H)
    outs = []
    for _ in range(num_steps):
        gates = x @ w_ih.T + b_ih + h @ w_hh.T + b_hh
        i_g = jax.nn.sigmoid(gates[:, 0 * H:1 * H])
        f_g = jax.nn.sigmoid(gates[:, 1 * H:2 * H])
        g_g = jnp.tanh(gates[:, 2 * H:3 * H])
        o_g = jax.nn.sigmoid(gates[:, 3 * H:4 * H])
        c = f_g * c + i_g * g_g
        h = o_g * jnp.tanh(c)
        out = h @ w_lin.T + b_lin
        outs.append(out)
        x = out
    return jnp.stack(outs), h, c


if __name__ == "__main__":
    # Small shapes consistent with the module's forward (num_layers = 1).
    B, I, H = 8, 16, 32   # batch, input_size, hidden_size
    T = 8                 # autoregressive decode steps for the fused-loop test

    key = jax.random.PRNGKey(0)
    ks = jax.random.split(key, 9)
    x = jax.random.normal(ks[0], (B, I), jnp.float32)
    h0 = jax.random.normal(ks[1], (1, B, H), jnp.float32)
    c0 = jax.random.normal(ks[2], (1, B, H), jnp.float32)

    # Deterministic parameter init (shapes follow nn.LSTM / nn.Linear).
    scale = 1.0 / jnp.sqrt(H)
    w_ih = jax.random.uniform(ks[3], (4 * H, I), jnp.float32, -scale, scale)
    w_hh = jax.random.uniform(ks[4], (4 * H, H), jnp.float32, -scale, scale)
    b_ih = jax.random.uniform(ks[5], (4 * H,), jnp.float32, -scale, scale)
    b_hh = jax.random.uniform(ks[6], (4 * H,), jnp.float32, -scale, scale)
    w_lin = jax.random.uniform(ks[7], (I, H), jnp.float32, -scale, scale)
    b_lin = jax.random.uniform(ks[8], (I,), jnp.float32, -scale, scale)

    # 1) Single-step forward: exact module semantics.
    out, (h1, c1) = decoder_forward(x, h0, c0, w_ih, w_hh, b_ih, b_hh, w_lin, b_lin)
    jax.block_until_ready((out, h1, c1))

    ref_out1, ref_h1, ref_c1 = _reference_decode(
        x, h0, c0, w_ih, w_hh, b_ih, b_hh, w_lin, b_lin, num_steps=1)
    assert jnp.allclose(out, ref_out1[0], atol=1e-5, rtol=1e-5)
    assert jnp.allclose(h1.reshape(B, H), ref_h1, atol=1e-5, rtol=1e-5)
    assert jnp.allclose(c1.reshape(B, H), ref_c1, atol=1e-5, rtol=1e-5)

    # 2) T autoregressive steps fused into a single kernel launch.
    out_seq, (hT, cT) = decoder_decode(x, h0, c0, w_ih, w_hh, b_ih, b_hh,
                                       w_lin, b_lin, num_steps=T)
    jax.block_until_ready((out_seq, hT, cT))

    ref_seq, ref_hT, ref_cT = _reference_decode(
        x, h0, c0, w_ih, w_hh, b_ih, b_hh, w_lin, b_lin, num_steps=T)
    assert jnp.allclose(out_seq, ref_seq, atol=5e-5, rtol=5e-5)
    assert jnp.allclose(hT.reshape(B, H), ref_hT, atol=5e-5, rtol=5e-5)
    assert jnp.allclose(cT.reshape(B, H), ref_cT, atol=5e-5, rtol=5e-5)

    print("KERNEL_OK")
</pallas_src>

<mosaic_0001>
module attributes {stable_mosaic.version = 11 : i64} {
  func.func @decoder_kernel(%arg0: i32, %arg1: memref<8x48xf32, #tpu.memory_space<vmem>>, %arg2: memref<8x32xf32, #tpu.memory_space<vmem>>, %arg3: memref<48x128xf32, #tpu.memory_space<vmem>>, %arg4: memref<1x128xf32, #tpu.memory_space<vmem>>, %arg5: memref<32x48xf32, #tpu.memory_space<vmem>>, %arg6: memref<1x48xf32, #tpu.memory_space<vmem>>, %arg7: memref<1x8x16xf32, #tpu.memory_space<vmem>>, %arg8: memref<8x32xf32, #tpu.memory_space<vmem>>, %arg9: memref<8x32xf32, #tpu.memory_space<vmem>>, %arg10: memref<8x48xf32, #tpu.memory_space<vmem>>, %arg11: memref<8x32xf32, #tpu.memory_space<vmem>>) attributes {dimension_semantics = [#tpu.dimension_semantics<arbitrary>], iteration_bounds = array<i64: 1>, scalar_prefetch = 0 : i64, scratch_operands = 2 : i64, tpu.core_type = #tpu.core_type<tc>, window_params = [{pipeline_mode = #tpu.pipeline_mode<synchronous>, transform_indices = @transform_0, window_bounds = array<i64: 8, 48>}, {pipeline_mode = #tpu.pipeline_mode<synchronous>, transform_indices = @transform_1, window_bounds = array<i64: 8, 32>}, {pipeline_mode = #tpu.pipeline_mode<synchronous>, transform_indices = @transform_2, window_bounds = array<i64: 48, 128>}, {pipeline_mode = #tpu.pipeline_mode<synchronous>, transform_indices = @transform_3, window_bounds = array<i64: 1, 128>}, {pipeline_mode = #tpu.pipeline_mode<synchronous>, transform_indices = @transform_4, window_bounds = array<i64: 32, 48>}, {pipeline_mode = #tpu.pipeline_mode<synchronous>, transform_indices = @transform_5, window_bounds = array<i64: 1, 48>}, {transform_indices = @transform_6, window_bounds = array<i64: 1, 8, 16>}, {pipeline_mode = #tpu.pipeline_mode<synchronous>, transform_indices = @transform_7, window_bounds = array<i64: 8, 32>}, {pipeline_mode = #tpu.pipeline_mode<synchronous>, transform_indices = @transform_8, window_bounds = array<i64: 8, 32>}]} {
    %c0_i32 = arith.constant 0 : i32
    %0 = arith.cmpi eq, %arg0, %c0_i32 : i32
    %1 = arith.extui %0 : i1 to i32
    %c0_i32_0 = arith.constant 0 : i32
    %2 = arith.cmpi ne, %1, %c0_i32_0 : i32
    scf.if %2 {
      %c0_25 = arith.constant 0 : index
      %c0_26 = arith.constant 0 : index
      %45 = vector.load %arg1[%c0_25, %c0_26] : memref<8x48xf32, #tpu.memory_space<vmem>>, vector<8x48xf32>
      %c0_27 = arith.constant 0 : index
      %c0_28 = arith.constant 0 : index
      %46 = vector.load %arg10[%c0_27, %c0_28] : memref<8x48xf32, #tpu.memory_space<vmem>>, vector<8x48xf32>
      tpu.vector_store %arg10[%c0_27, %c0_28], %45 {strides = array<i32>} : memref<8x48xf32, #tpu.memory_space<vmem>>, vector<8x48xf32>,
      %c0_29 = arith.constant 0 : index
      %c0_30 = arith.constant 0 : index
      %47 = vector.load %arg2[%c0_29, %c0_30] : memref<8x32xf32, #tpu.memory_space<vmem>>, vector<8x32xf32>
      %c0_31 = arith.constant 0 : index
      %c0_32 = arith.constant 0 : index
      %48 = vector.load %arg11[%c0_31, %c0_32] : memref<8x32xf32, #tpu.memory_space<vmem>>, vector<8x32xf32>
      tpu.vector_store %arg11[%c0_31, %c0_32], %47 {strides = array<i32>} : memref<8x32xf32, #tpu.memory_space<vmem>>, vector<8x32xf32>,
    } else {
    }
    %c0 = arith.constant 0 : index
    %c0_1 = arith.constant 0 : index
    %3 = vector.load %arg10[%c0, %c0_1] : memref<8x48xf32, #tpu.memory_space<vmem>>, vector<8x48xf32>
    %c0_2 = arith.constant 0 : index
    %c0_3 = arith.constant 0 : index
    %4 = vector.load %arg11[%c0_2, %c0_3] : memref<8x32xf32, #tpu.memory_space<vmem>>, vector<8x32xf32>
    %c0_4 = arith.constant 0 : index
    %c0_5 = arith.constant 0 : index
    %5 = vector.load %arg3[%c0_4, %c0_5] : memref<48x128xf32, #tpu.memory_space<vmem>>, vector<48x128xf32>
    %cst = arith.constant dense<0.000000e+00> : vector<8x128xf32>
    %6 = tpu.matmul %3, %5, %cst {dimension_numbers = #tpu.dot_dimension_numbers<[1], [0], [0], [1], [0, 0, 1, 1], [], []>} : vector<8x48xf32>, vector<48x128xf32>, vector<8x128xf32> -> vector<8x128xf32>
    %c0_6 = arith.constant 0 : index
    %c0_7 = arith.constant 0 : index
    %7 = vector.load %arg4[%c0_6, %c0_7] : memref<1x128xf32, #tpu.memory_space<vmem>>, vector<1x128xf32>
    %8 = vector.broadcast %7 : vector<1x128xf32> to vector<8x128xf32>
    %9 = arith.addf %6, %8 : vector<8x128xf32>
    %10 = tpu.iota {dimensions = array<i32: 1>} : vector<8x128xi32>
    %c64_i32 = arith.constant 64 : i32
    %11 = vector.broadcast %c64_i32 : i32 to vector<8x128xi32>
    %12 = arith.cmpi sge, %10, %11 : vector<8x128xi32>
    %c96_i32 = arith.constant 96 : i32
    %13 = vector.broadcast %c96_i32 : i32 to vector<8x128xi32>
    %14 = arith.cmpi slt, %10, %13 : vector<8x128xi32>
    %15 = arith.andi %12, %14 : vector<8x128xi1>
    %16 = math.tanh %9 : vector<8x128xf32>
    %17 = arith.negf %9 : vector<8x128xf32>
    %18 = math.exp %17 : vector<8x128xf32>
    %cst_8 = arith.constant 1.000000e+00 : f32
    %19 = vector.broadcast %cst_8 : f32 to vector<8x128xf32>
    %20 = arith.addf %19, %18 : vector<8x128xf32>
    %21 = arith.divf %19, %20 : vector<8x128xf32>
    %22 = arith.select %15, %16, %21 : vector<8x128xi1>, vector<8x128xf32>
    %23 = vector.extract_strided_slice %22 {offsets = [0, 0], sizes = [8, 32], strides = [1, 1]} : vector<8x128xf32> to vector<8x32xf32>
    %24 = vector.extract_strided_slice %22 {offsets = [0, 32], sizes = [8, 32], strides = [1, 1]} : vector<8x128xf32> to vector<8x32xf32>
    %25 = vector.extract_strided_slice %22 {offsets = [0, 64], sizes = [8, 32], strides = [1, 1]} : vector<8x128xf32> to vector<8x32xf32>
    %26 = vector.extract_strided_slice %22 {offsets = [0, 96], sizes = [8, 32], strides = [1, 1]} : vector<8x128xf32> to vector<8x32xf32>
    %27 = arith.mulf %24, %4 : vector<8x32xf32>
    %28 = arith.mulf %23, %25 : vector<8x32xf32>
    %29 = arith.addf %27, %28 : vector<8x32xf32>
    %30 = math.tanh %29 : vector<8x32xf32>
    %31 = arith.mulf %26, %30 : vector<8x32xf32>
    %c0_9 = arith.constant 0 : index
    %c0_10 = arith.constant 0 : index
    %32 = vector.load %arg5[%c0_9, %c0_10] : memref<32x48xf32, #tpu.memory_space<vmem>>, vector<32x48xf32>
    %cst_11 = arith.constant dense<0.000000e+00> : vector<8x48xf32>
    %33 = tpu.matmul %31, %32, %cst_11 {dimension_numbers = #tpu.dot_dimension_numbers<[1], [0], [0], [1], [0, 0, 1, 1], [], []>} : vector<8x32xf32>, vector<32x48xf32>, vector<8x48xf32> -> vector<8x48xf32>
    %c0_12 = arith.constant 0 : index
    %c0_13 = arith.constant 0 : index
    %34 = vector.load %arg6[%c0_12, %c0_13] : memref<1x48xf32, #tpu.memory_space<vmem>>, vector<1x48xf32>
    %35 = vector.broadcast %34 : vector<1x48xf32> to vector<8x48xf32>
    %36 = arith.addf %33, %35 : vector<8x48xf32>
    %37 = vector.extract_strided_slice %36 {offsets = [0, 0], sizes = [8, 16], strides = [1, 1]} : vector<8x48xf32> to vector<8x16xf32>
    %c0_14 = arith.constant 0 : index
    %c0_15 = arith.constant 0 : index
    %c0_16 = arith.constant 0 : index
    %38 = vector.load %arg7[%c0_14, %c0_15, %c0_16] : memref<1x8x16xf32, #tpu.memory_space<vmem>>, vector<1x8x16xf32>
    %39 = vector.shape_cast %38 : vector<1x8x16xf32> to vector<8x16xf32>
    %40 = vector.shape_cast %37 : vector<8x16xf32> to vector<1x8x16xf32>
    tpu.vector_store %arg7[%c0_14, %c0_15, %c0_16], %40 {strides = array<i32>} : memref<1x8x16xf32, #tpu.memory_space<vmem>>, vector<1x8x16xf32>,
    %c0_17 = arith.constant 0 : index
    %c0_18 = arith.constant 0 : index
    %41 = vector.load %arg8[%c0_17, %c0_18] : memref<8x32xf32, #tpu.memory_space<vmem>>, vector<8x32xf32>
    tpu.vector_store %arg8[%c0_17, %c0_18], %31 {strides = array<i32>} : memref<8x32xf32, #tpu.memory_space<vmem>>, vector<8x32xf32>,
    %c0_19 = arith.constant 0 : index
    %c0_20 = arith.constant 0 : index
    %42 = vector.load %arg9[%c0_19, %c0_20] : memref<8x32xf32, #tpu.memory_space<vmem>>, vector<8x32xf32>
    tpu.vector_store %arg9[%c0_19, %c0_20], %29 {strides = array<i32>} : memref<8x32xf32, #tpu.memory_space<vmem>>, vector<8x32xf32>,
    %c0_21 = arith.constant 0 : index
    %c0_22 = arith.constant 0 : index
    %43 = vector.load %arg10[%c0_21, %c0_22] : memref<8x48xf32, #tpu.memory_space<vmem>>, vector<8x48xf32>
    tpu.vector_store %arg10[%c0_21, %c0_22], %36 {strides = array<i32>} : memref<8x48xf32, #tpu.memory_space<vmem>>, vector<8x48xf32>,
    %c0_23 = arith.constant 0 : index
    %c0_24 = arith.constant 0 : index
    %44 = vector.load %arg11[%c0_23, %c0_24] : memref<8x32xf32, #tpu.memory_space<vmem>>, vector<8x32xf32>
    tpu.vector_store %arg11[%c0_23, %c0_24], %29 {strides = array<i32>} : memref<8x32xf32, #tpu.memory_space<vmem>>, vector<8x32xf32>,
    return
  }
  func.func @transform_0(%arg0: i32) -> (i32, i32) {
    %c0_i32 = arith.constant 0 : i32
    %c0_i32_0 = arith.constant 0 : i32
    %c0_i32_1 = arith.constant 0 : i32
    return %c0_i32, %c0_i32_0 : i32, i32
  }
  func.func @transform_1(%arg0: i32) -> (i32, i32) {
    %c0_i32 = arith.constant 0 : i32
    %c0_i32_0 = arith.constant 0 : i32
    %c0_i32_1 = arith.constant 0 : i32
    return %c0_i32, %c0_i32_0 : i32, i32
  }
  func.func @transform_2(%arg0: i32) -> (i32, i32) {
    %c0_i32 = arith.constant 0 : i32
    %c0_i32_0 = arith.constant 0 : i32
    %c0_i32_1 = arith.constant 0 : i32
    return %c0_i32, %c0_i32_0 : i32, i32
  }
  func.func @transform_3(%arg0: i32) -> (i32, i32) {
    %c0_i32 = arith.constant 0 : i32
    %c0_i32_0 = arith.constant 0 : i32
    %c0_i32_1 = arith.constant 0 : i32
    return %c0_i32, %c0_i32_0 : i32, i32
  }
  func.func @transform_4(%arg0: i32) -> (i32, i32) {
    %c0_i32 = arith.constant 0 : i32
    %c0_i32_0 = arith.constant 0 : i32
    %c0_i32_1 = arith.constant 0 : i32
    return %c0_i32, %c0_i32_0 : i32, i32
  }
  func.func @transform_5(%arg0: i32) -> (i32, i32) {
    %c0_i32 = arith.constant 0 : i32
    %c0_i32_0 = arith.constant 0 : i32
    %c0_i32_1 = arith.constant 0 : i32
    return %c0_i32, %c0_i32_0 : i32, i32
  }
  func.func @transform_6(%arg0: i32) -> (i32, i32, i32) {
    %c0_i32 = arith.constant 0 : i32
    %c0_i32_0 = arith.constant 0 : i32
    %c0_i32_1 = arith.constant 0 : i32
    return %arg0, %c0_i32, %c0_i32_0 : i32, i32, i32
  }
  func.func @transform_7(%arg0: i32) -> (i32, i32) {
    %c0_i32 = arith.constant 0 : i32
    %c0_i32_0 = arith.constant 0 : i32
    %c0_i32_1 = arith.constant 0 : i32
    return %c0_i32, %c0_i32_0 : i32, i32
  }
  func.func @transform_8(%arg0: i32) -> (i32, i32) {
    %c0_i32 = arith.constant 0 : i32
    %c0_i32_0 = arith.constant 0 : i32
    %c0_i32_1 = arith.constant 0 : i32
    return %c0_i32, %c0_i32_0 : i32, i32
  }
}

</mosaic_0001>

<bundles_post_ra>
// kernel: tpu_custom_call.1
= control target key start
LH: loop header
LB: loop body
LE: loop exit
PB: predicated region body
PF: predicated region fallthrough
CT: control target
= control target key end

     0   :  { %14 = vsyncpa [#allocation5], 0  ;;  %s570_s0 = inlined_call_operand.hbm [shape: f32[8,48], index: 0, kind: input, shape index: {}]   ;;  %s571_s1 = inlined_call_operand.hbm [shape: f32[8,32], index: 1, kind: input, shape index: {}]   ;;  %s572_s2 = inlined_call_operand.hbm [shape: f32[48,128], index: 2, kind: input, shape index: {}]   ;;  %s573_s3 = inlined_call_operand.vmem [shape: f32[1,128], index: 3, kind: input, shape index: {}]   ;;  %s574_s4 = inlined_call_operand.hbm [shape: f32[32,48], index: 4, kind: input, shape index: {}]   ;;  %s575_s5 = inlined_call_operand.vmem [shape: f32[1,48], index: 5, kind: input, shape index: {}]   ;;  %s576_s6 = inlined_call_operand.hbm [shape: f32[1,8,16], index: 6, kind: output, shape index: {0}]   ;;  %s577_s7 = inlined_call_operand.hbm [shape: f32[8,32], index: 7, kind: output, shape index: {1}]   ;;  %s578_s8 = inlined_call_operand.hbm [shape: f32[8,32], index: 8, kind: output, shape index: {2}]  }
   0x1   :  { %15 = vsyncpa [#allocation8], 0 }
   0x2   :  { %16 = vsyncpa [#allocation11], 0 }
   0x3   :  { %17 = vsyncpa [#allocation6], 0  ;;  %s35_s29 = sshll.u32 %s571_s1, 4  ;;  %s36_s29 = int_to_ptr.hbm [resolvable:$true] %s35_s29 }
   0x4   :  { %18 = vsyncpa [#allocation14], 0  ;;  %s478_s30 = smov [#allocation7]   ;;  %s24_s12 = sshll.u32 %s570_s0, 4  ;;  %s25_s12 = int_to_ptr.hbm [resolvable:$true] %s24_s12 }
   0x5   :  { %s37_s9 = sshll.u32 %s478_s30, 4  ;;  %s479_s13 = smov [#allocation4]   ;;  %s38_s9 = int_to_ptr.vmem [resolvable:$true] %s37_s9 }
   0x6   :  { %40 = dma.hbm_to_vmem [thread:$0]  %s36_s29, 128, %s38_s9, [#allocation8]  }
   0x7   :  { %s26_s14 = sshll.u32 %s479_s13, 4  ;;  %s45_s17 = sshll.u32 %s572_s2, 4  ;;  %s27_s14 = int_to_ptr.vmem [resolvable:$true] %s26_s14  ;;  %s46_s17 = int_to_ptr.hbm [resolvable:$true] %s45_s17 }
   0x8   :  { %29 = dma.hbm_to_vmem [thread:$0]  %s25_s12, 128, %s27_s14, [#allocation5]  }
   0x9   :  { %s480_s1 = smov [#allocation9]   ;;  %s60_s21 = sshll.u32 %s574_s4, 4  ;;  %s61_s21 = int_to_ptr.hbm [resolvable:$true] %s60_s21 }
   0xa   :  { %s47_s18 = sshll.u32 %s480_s1, 4  ;;  %s481_s22 = smov 128   ;;  %s48_s18 = int_to_ptr.vmem [resolvable:$true] %s47_s18 }
   0xb   :  { %s482_s0 = smov 8   ;;  %s483_s23 = smov [#allocation10]  }
   0xc   :  { %53 = dma.hbm_to_vmem [thread:$0]  %s46_s17, 768, %s48_s18, [#allocation8], %s481_s22, %s481_s22, %s482_s0  }
   0xd   :  { %s62_s24 = sshll.u32 %s483_s23, 4  ;;  %s63_s24 = int_to_ptr.vmem [resolvable:$true] %s62_s24 }
   0xe   :  { %68 = dma.hbm_to_vmem [thread:$0]  %s61_s21, 512, %s63_s24, [#allocation11], %s481_s22, %s481_s22, %s482_s0  }
   0xf   :  { %468 = dma.done.wait [#allocation5], 128  }
  0x10   :  { %469 = vsyncadd [#allocation5], 4294967168 }
  0x11   :  { %470 = dma.done.wait [#allocation8], 896  }
  0x12   :  { %471 = vsyncadd [#allocation8], 4294966400 }
  0x13   :  { %472 = dma.done.wait [#allocation11], 512  }
  0x14   :  { %473 = vsyncadd [#allocation11], 4294966784  ;;  %v104_v0 = vld [vmem:[#allocation9 + $0x28] sm:$0xff]  ;;  %v103_v1 = vld [vmem:[#allocation9 + $0x20] sm:$0xff]  ;;  %vm92_vm0 = vcmask 392192   ;;  %vm95_vm1 = vcmask 261120   ;;  %v133_v15 = vlaneseq }
  0x15   :  { %123 = vmatpush.msra.mxu0 %v104_v0  ;;  %v102_v2 = vld [vmem:[#allocation9 + $0x18] sm:$0xff]  ;;  %v91_v3 = vld [vmem:[#allocation4] sm:$0xff]  ;;  %v100_v5 = vld [vmem:[#allocation9 + $0x8] sm:$0xff]  ;;  %s485_s25 = smov 32   ;;  %s486_s26 = smov 96   ;;  %vm214_vm9 = vcmask 130048  }
  0x16   :  { %93 = vst.msk [vmem:[#allocation2] sm:$0xff] %vm92_vm0, %v91_v3  ;;  %v101_v4 = vld [vmem:[#allocation9 + $0x10] sm:$0xff]  ;;  %v99_v6 = vld [vmem:[#allocation9] sm:$0xff]  ;;  %v94_v9 = vld [vmem:[#allocation7] sm:$0xff]  ;;  %v134_v17 = vand.u32 127, %v133_v15  ;;  %s487_s27 = smov [#allocation13]  }
  0x17   :  { %124 = vmatpush.msra.mxu0 %v103_v1  ;;  %v290_v8 = vld [vmem:[%s573_s3] ss:$0 sm:$0xff]  ;;  %96 = vst.msk [vmem:[#allocation3] sm:$0xff] %vm95_vm1, %v94_v9  ;;  %s484_s3 = smov 64   ;;  %v183_v37 = vld [vmem:[#allocation10 + $0x18] sm:$0xff]  ;;  %v181_v39 = vld [vmem:[#allocation10 + $0x8] sm:$0xff] }
  0x18   :  { %vm135_vm2 = vcmp.ge.s32.totalorder %v134_v17, 64  ;;  %vm136_vm3 = vcmp.lt.s32.totalorder %v134_v17, 96  ;;  %v182_v38 = vld [vmem:[#allocation10 + $0x10] sm:$0xff]  ;;  %206 = vmatpush.msra.mxu1 %v183_v37  ;;  %v180_v40 = vld [vmem:[#allocation10] sm:$0xff]  ;;  %s241_s28 = sshll.u32 %s487_s27, 4  ;;  %s243_s9 = sshll.u32 %s577_s7, 4  ;;  %s242_s28 = int_to_ptr.vmem [resolvable:$true] %s241_s28  ;;  %s244_s9 = int_to_ptr.hbm [resolvable:$true] %s243_s9 }
  0x19   :  { %125 = vmatpush.msra.mxu0 %v102_v2  ;;  %vm137_vm5 = vmand %vm135_vm2, %vm136_vm3  ;;  %s488_s10 = smov [#allocation15]   ;;  %s254_s14 = sshll.u32 %s578_s8, 4  ;;  %v291_v45 = vld [vmem:[%s575_s5] ss:$0 sm:$0xff]  ;;  %s255_s14 = int_to_ptr.hbm [resolvable:$true] %s254_s14 }
  0x1a   :  { %207 = vmatpush.msra.mxu1 %v182_v38  ;;  %s252_s11 = sshll.u32 %s488_s10, 4  ;;  %s489_s16 = smov [#allocation12]   ;;  %s253_s11 = int_to_ptr.vmem [resolvable:$true] %s252_s11 }
  0x1b   :  { %126 = vmatpush.msra.mxu0 %v101_v4  ;;  %s230_s17 = sshll.u32 %s489_s16, 4  ;;  %s232_s19 = sshll.u32 %s576_s6, 4  ;;  %s231_s17 = int_to_ptr.vmem [resolvable:$true] %s230_s17  ;;  %s233_s19 = int_to_ptr.hbm [resolvable:$true] %s232_s19 }
  0x1c   :  { %208 = vmatpush.msra.mxu1 %v181_v39 }
  0x1d   :  { %127 = vmatpush.msra.mxu0 %v100_v5  ;;  %v97_v7 = vld [vmem:[#allocation2] sm:$0xff] }
  0x1e   :  { %v98_v29 = vld [vmem:[#allocation3] sm:$0xff]  ;;  %209 = vmatpush.msra.mxu1 %v180_v40 }
  0x1f   :  { %128 = vmatpush.msra.mxu0 %v99_v6 }
  0x20   :  { %275 = vmatmul.msk.f32.vlgmr.msra.gmra.mxu0 %vm92_vm0, %v97_v7 }
  0x9d   :  { %v130_v10 = vpop.f32.mrf.mxu0 }
  0x9e   :  { %v131_v11 = vadd.f32 %v290_v8, %v130_v10 }
  0xa0   :  { %v276_v12 = vmul.f32 -1.442695, %v131_v11 }
  0xa2   :  { %292 = vpow2.f32 %v276_v12 }
  0xa8   :  { %v293_v13 = vpop.eup %292 }
  0xa9   :  { %v142_v14 = vadd.f32 1.0, %v293_v13 }
  0xab   :  { %294 = vrcp.f32 %v142_v14  ;;  %v154_v20 = vand.u32 2147483648, %v142_v14  ;;  %v152_v22 = vand.u32 2147483647, %v142_v14  ;;  %vm148_vm6 = vweird.f32 %v142_v14 }
  0xac   :  { %296 = vtanh.f32 %v131_v11 }
  0xad   :  { %v155_v24 = vor.u32 1.1754944e-38, %v154_v20  ;;  %vm153_vm8 = vcmp.eq.f32.partialorder %v152_v22, 8.507059e+37 }
  0xb1   :  { %v295_v16 = vpop.eup %294 }
  0xb2   :  { %v144_v18 = vmul.f32 %v295_v16, %v142_v14  ;;  %vm149_vm4 = vweird.f32 %v295_v16  ;;  %v297_v26 = vpop.eup %296 }
  0xb3   :  { %vm150_vm7 = vmor %vm148_vm6, %vm149_vm4 }
  0xb4   :  { %v145_v19 = vsub.f32 1.0, %v144_v18 }
  0xb6   :  { %v146_v21 = vmul.f32 %v295_v16, %v145_v19 }
  0xb8   :  { %v147_v23 = vadd.f32 %v295_v16, %v146_v21 }
  0xba   :  { %v151_v25 = vsel %vm150_vm7, %v295_v16, %v147_v23 }
  0xbb   :  { %v156_v27 = vsel %vm153_vm8, %v155_v24, %v151_v25 }
  0xbc   :  { %v158_v28 = vsel %vm137_vm5, %v297_v26, %v156_v27 }
  0xbd   :  { %165 = vrot.lane.b32.xlu0 %v158_v28, %s484_s3 }
  0xc5   :  { %160 = vrot.lane.b32.xlu0 %v98_v29, %s485_s25 }
 0x12f   :  { %v166_v30 = vpop.permute.xlu0 %165 }
 0x130   :  { %v168_v31 = vmul.f32 %v166_v30, %v158_v28 }
 0x132   :  { %170 = vrot.lane.b32.xlu1 %v168_v31, %s485_s25 }
 0x137   :  { %v161_v32 = vpop.permute.xlu0 %160 }
 0x138   :  { %v163_v33 = vmul.f32 %v161_v32, %v158_v28 }
 0x1a4   :  { %v171_v34 = vpop.permute.xlu1 %170 }
 0x1a5   :  { %v173_v35 = vadd.f32 %v171_v34, %v163_v33 }
 0x1a7   :  { %298 = vtanh.f32 %v173_v35 }
 0x1ad   :  { %v299_v36 = vpop.eup %298 }
 0x1ae   :  { %176 = vrot.lane.b32.xlu1 %v299_v36, %s484_s3 }
 0x220   :  { %v177_v41 = vpop.permute.xlu1 %176 }
 0x221   :  { %v179_v42 = vmul.f32 %v177_v41, %v158_v28 }
 0x223   :  { %189 = vrot.lane.b32.xlu2 %v179_v42, %s485_s25 }
 0x22b   :  { %219 = vrot.lane.b32.xlu2 %v173_v35, %s486_s26 }
 0x27d   :  { %v190_v43 = vpop.permute.xlu2 %189 }
 0x27e   :  { %217 = vst.msk [vmem:[#allocation13] sm:$0xff] %vm95_vm1, %v190_v43  ;;  %277 = vmatmul.msk.f32.vlgmr.msra.gmra.mxu1 %vm95_vm1, %v190_v43 }
 0x27f   :  { %246 = dma.vmem_to_hbm [thread:$0]  %s242_s28, 128, %s244_s9, [#allocation14]  }
 0x285   :  { %v220_v44 = vpop.permute.xlu2 %219 }
 0x286   :  { %222 = vst.msk [vmem:[#allocation15] sm:$0xff] %vm95_vm1, %v220_v44 }
 0x287   :  { %224 = vst.msk [vmem:[#allocation3] sm:$0xff] %vm95_vm1, %v220_v44  ;;  %257 = dma.vmem_to_hbm [thread:$0]  %s253_s11, 128, %s255_s14, [#allocation14]  }
 0x2fb   :  { %v211_v46 = vpop.f32.mrf.mxu1 }
 0x2fc   :  { %v212_v47 = vadd.f32 %v291_v45, %v211_v46 }
 0x2fe   :  { %223 = vst.msk [vmem:[#allocation2] sm:$0xff] %vm92_vm0, %v212_v47 }
 0x2ff   :  { %215 = vst.msk [vmem:[#allocation12] sm:$0xff] %vm214_vm9, %v212_v47 }
 0x300   :  { %235 = dma.vmem_to_hbm [thread:$0]  %s231_s17, 128, %s233_s19, [#allocation6]  }
 0x301   :  { %474 = dma.done.wait [#allocation6], 128  }
 0x302   :  { %475 = vsyncadd [#allocation6], 4294967168 }
 0x303   :  { %476 = dma.done.wait [#allocation14], 256  }
 0x304   :  { %477 = vsyncadd [#allocation14], 4294967040 }
 0x305   :  { %270 = vsyncpa [#allocation5], 1 }
 0x306   :  { %271 = vsyncpa [#allocation8], 1 }
 0x307   :  { %272 = vsyncpa [#allocation11], 1 }
 0x308   :  { %273 = vsyncpa [#allocation6], 1 }
 0x309   :  { %274 = vsyncpa [#allocation14], 1 }

</bundles_post_ra>
